<compile_context>
chip_gen: v7x
topology: tpu7x:2x2x1
jax: 0.10.0
libtpu: 0.0.40
codegen_flags: <defaults>
</compile_context>

<pallas_src>
import jax
import jax.numpy as jnp
from jax.experimental import pallas as pl
from jax.experimental.pallas import tpu as pltpu


def _round_up(a: int, b: int) -> int:
    return (a + b - 1) // b * b


def _cdiv(a: int, b: int) -> int:
    return (a + b - 1) // b


def _vmem_capacity_bytes() -> int:
    try:
        return int(pltpu.get_tpu_info().vmem_capacity_bytes)
    except Exception:
        return 64 * 1024 * 1024  # conservative (v7x-sized) fallback


def _clustering_kernel(x_ref, wt_ref, wsq_ref, q_ref):
    x = x_ref[...]                                         # (TN, D)    f32
    wt = wt_ref[...]                                       # (D, Kpad)  f32, already scaled by -2
    w_sq = wsq_ref[...]                                    # (1, Kpad)  f32, padded cols = 1e30

    # per-row squared norm of x (XLU reduce, unavoidable per tile)
    x_sq = jnp.sum(x * x, axis=1, keepdims=True)           # (TN, 1)

    # cross term on the MXU with a canonical (D on sublane, Kpad on lane) RHS.
    # wt is pre-scaled by -2, so xw == -2 * x @ w^T.
    xw = jnp.dot(x, wt, preferred_element_type=jnp.float32)  # (TN, Kpad)

    # squared distances; clamp tiny negative values from cancellation
    dist = jnp.maximum(x_sq + w_sq + xw, 0.0)               # (TN, Kpad)

    # student-t (alpha=1) numerator: 1 / (1 + dist)
    # EUP approx reciprocal + one Newton step -> ~f32 accuracy, no VALU divide.
    denom = 1.0 + dist
    r = pl.reciprocal(denom, approx=True)
    r = r * (2.0 - denom * r)
    # padded clusters have dist ~ 1e30 -> r ~ 1e-30: negligible in the row sum,
    # so no per-element mask is needed here.

    # row-normalize over clusters (exact reciprocal -> rows sum to 1)
    row_sum = jnp.sum(r, axis=1, keepdims=True)             # (TN, 1)
    inv_row = pl.reciprocal(row_sum, approx=False)
    q_ref[...] = (r * inv_row).astype(q_ref.dtype)


def clustering_layer(x, weights):
    """x: (N, D) float32, weights: (K, D) float32 -> q: (N, K) float32."""
    x = jnp.asarray(x, jnp.float32)
    weights = jnp.asarray(weights, jnp.float32)
    N, D = x.shape
    K, D2 = weights.shape
    assert D == D2

    # ---- lane-dense output: pad clusters up to a multiple of 128 ----------
    k_pad = _round_up(max(K, 128), 128)

    # ---- resident weights: pad, fold in the -2, pre-transpose to (D, Kpad) --
    w_pad = jnp.pad(weights, ((0, k_pad - K), (0, 0))) if k_pad != K else weights
    w_t = (-2.0 * w_pad).T                                  # (D, Kpad)
    # hoisted ||w||^2 in (1, Kpad) layout; padded clusters get a large finite
    # sentinel (NOT inf: inf would NaN through the Newton step) so their
    # numerators underflow to ~1e-30 and drop out of the normalization.
    w_sq = jnp.sum(w_pad * w_pad, axis=1)
    if k_pad != K:
        w_sq = w_sq.at[K:].set(1e30)
    w_sq = w_sq[None, :]                                    # (1, Kpad)

    # ---- generation-aware VMEM budget --------------------------------------
    vmem_cap = _vmem_capacity_bytes()                       # 128 MiB v5e/v6e, 64 MiB v7x
    usable = int(0.75 * vmem_cap)                           # requested scoped limit
    resident = 4 * k_pad * (D + 1)                          # w_t + w_sq (one copy)
    # budget for the double-buffered x/q stream; count the resident buffers
    # twice (worst case if single-buffering is unavailable) and keep half the
    # remainder as headroom for in-kernel f32 temporaries / compiler scratch.
    stream_budget = max(2 * 1024 * 1024, (usable - 2 * resident) // 2)
    bytes_per_row = 8 * (D + k_pad) + 12 * k_pad            # 2x(x+q) DMA bufs + temps
    snap = 128 if N >= 128 else 8
    tn_max = max(snap, (min(2048, stream_budget // bytes_per_row) // snap) * snap)
    # TODO(synk): tile K as a second grid axis if the resident (D, Kpad)
    # weights alone exceed the VMEM budget (not needed at DEC-scale K*D).

    # ---- balanced N tiling: minimal padding waste, >=2 tiles for big N so
    #      both v7x TensorCores get work (neutral on v5e/v6e) -----------------
    n_tiles = max(1, _cdiv(N, tn_max))
    if N >= 512:
        n_tiles = max(n_tiles, 2)
    tn = _round_up(_cdiv(N, n_tiles), snap)
    n_pad = _round_up(N, tn)
    grid = (n_pad // tn,)

    x_p = jnp.pad(x, ((0, n_pad - N), (0, 0))) if n_pad != N else x

    cost = pl.CostEstimate(
        flops=2 * n_pad * k_pad * D,
        transcendentals=n_pad * k_pad + n_pad,              # EUP reciprocals
        bytes_accessed=4 * (n_pad * D + D * k_pad + k_pad + n_pad * k_pad),
    )

    def _call(resident_kwargs):
        return pl.pallas_call(
            _clustering_kernel,
            out_shape=jax.ShapeDtypeStruct((n_pad, k_pad), jnp.float32),
            grid=grid,
            in_specs=[
                pl.BlockSpec((tn, D), lambda i: (i, 0)),                      # stream x over N
                pl.BlockSpec((D, k_pad), lambda i: (0, 0), **resident_kwargs),  # -2*w^T resident
                pl.BlockSpec((1, k_pad), lambda i: (0, 0), **resident_kwargs),  # ||w||^2 resident
            ],
            out_specs=pl.BlockSpec((tn, k_pad), lambda i: (i, 0)),
            compiler_params=pltpu.CompilerParams(
                dimension_semantics=("parallel",),          # N-tiles independent
                vmem_limit_bytes=usable,
            ),
            cost_estimate=cost,
        )(x_p, w_t, w_sq)

    try:
        # Resident (constant index_map) inputs don't need double-buffering.
        q_pad = _call(dict(pipeline_mode=pl.Buffered(1)))
    except Exception:
        # Fallback: default (double-buffered) pipelining; budget already
        # accounts for the resident buffers twice, so this stays VMEM-safe.
        q_pad = _call({})

    # slice off N padding and the padded clusters
    return q_pad[:N, :K]


def clustering_layer_ref(x, weights):
    # pure-JAX reference matching the PyTorch forward exactly
    diff = x[:, None, :] - weights[None, :, :]              # (N, K, D)
    q = 1.0 / (1.0 + jnp.sum(diff * diff, axis=2))          # (N, K)
    q = q / jnp.sum(q, axis=1, keepdims=True)
    return q


if __name__ == "__main__":
    # Small shapes consistent with the module: N=8 samples, D=32 features,
    # K=4 clusters.
    N, D, K = 8, 32, 4
    key = jax.random.PRNGKey(0)
    kx, kw = jax.random.split(key)

    x = jax.random.normal(kx, (N, D), dtype=jnp.float32)

    # Deterministic xavier_normal_ init for weights of shape (K, D):
    # std = sqrt(2 / (fan_in + fan_out)) = sqrt(2 / (K + D))
    std = (2.0 / (K + D)) ** 0.5
    weights = std * jax.random.normal(kw, (K, D), dtype=jnp.float32)

    q = clustering_layer(x, weights)
    q = jax.block_until_ready(q)

    q_ref = clustering_layer_ref(x, weights)
    assert q.shape == (N, K)
    # slightly relaxed tolerance to accommodate the EUP reciprocal path and
    # the ||x||^2 + ||w||^2 - 2 x.w^T expansion
    assert jnp.allclose(q, q_ref, atol=1e-4, rtol=1e-4), "mismatch vs reference"
    assert jnp.allclose(jnp.sum(q, axis=1), 1.0, atol=1e-5), "rows must sum to 1"

    print("KERNEL_OK")
</pallas_src>

<mosaic_0001>
module attributes {stable_mosaic.version = 11 : i64} {
  func.func @_clustering_kernel(%arg0: i32, %arg1: memref<8x32xf32, #tpu.memory_space<vmem>>, %arg2: memref<32x128xf32, #tpu.memory_space<vmem>>, %arg3: memref<1x128xf32, #tpu.memory_space<vmem>>, %arg4: memref<8x128xf32, #tpu.memory_space<vmem>>) attributes {dimension_semantics = [#tpu.dimension_semantics<parallel>], iteration_bounds = array<i64: 1>, scalar_prefetch = 0 : i64, scratch_operands = 0 : i64, tpu.core_type = #tpu.core_type<tc>, window_params = [{transform_indices = @transform_0, window_bounds = array<i64: 8, 32>}, {pipeline_mode = #tpu.pipeline_mode<synchronous>, transform_indices = @transform_1, window_bounds = array<i64: 32, 128>}, {pipeline_mode = #tpu.pipeline_mode<synchronous>, transform_indices = @transform_2, window_bounds = array<i64: 1, 128>}, {transform_indices = @transform_3, window_bounds = array<i64: 8, 128>}]} {
    %c0 = arith.constant 0 : index
    %c0_0 = arith.constant 0 : index
    %0 = vector.load %arg1[%c0, %c0_0] : memref<8x32xf32, #tpu.memory_space<vmem>>, vector<8x32xf32>
    %c0_1 = arith.constant 0 : index
    %c0_2 = arith.constant 0 : index
    %1 = vector.load %arg2[%c0_1, %c0_2] : memref<32x128xf32, #tpu.memory_space<vmem>>, vector<32x128xf32>
    %c0_3 = arith.constant 0 : index
    %c0_4 = arith.constant 0 : index
    %2 = vector.load %arg3[%c0_3, %c0_4] : memref<1x128xf32, #tpu.memory_space<vmem>>, vector<1x128xf32>
    %3 = arith.mulf %0, %0 : vector<8x32xf32>
    %cst = arith.constant dense<0.000000e+00> : vector<8xf32>
    %4 = vector.multi_reduction <add>, %3, %cst [1] : vector<8x32xf32> to vector<8xf32>
    %5 = vector.shape_cast %4 : vector<8xf32> to vector<8x1xf32>
    %cst_5 = arith.constant dense<0.000000e+00> : vector<8x128xf32>
    %6 = tpu.matmul %0, %1, %cst_5 {dimension_numbers = #tpu.dot_dimension_numbers<[1], [0], [0], [1], [0, 0, 1, 1], [], []>} : vector<8x32xf32>, vector<32x128xf32>, vector<8x128xf32> -> vector<8x128xf32>
    %7 = vector.broadcast %5 : vector<8x1xf32> to vector<8x128xf32>
    %8 = vector.broadcast %2 : vector<1x128xf32> to vector<8x128xf32>
    %9 = arith.addf %7, %8 : vector<8x128xf32>
    %10 = arith.addf %9, %6 : vector<8x128xf32>
    %cst_6 = arith.constant 0.000000e+00 : f32
    %11 = vector.broadcast %cst_6 : f32 to vector<8x128xf32>
    %12 = arith.maximumf %10, %11 : vector<8x128xf32>
    %cst_7 = arith.constant 1.000000e+00 : f32
    %13 = vector.broadcast %cst_7 : f32 to vector<8x128xf32>
    %14 = arith.addf %13, %12 : vector<8x128xf32>
    %15 = tpu.reciprocal %14 {approx = true} : vector<8x128xf32> -> vector<8x128xf32>
    %16 = arith.mulf %14, %15 : vector<8x128xf32>
    %cst_8 = arith.constant 2.000000e+00 : f32
    %17 = vector.broadcast %cst_8 : f32 to vector<8x128xf32>
    %18 = arith.subf %17, %16 : vector<8x128xf32>
    %19 = arith.mulf %15, %18 : vector<8x128xf32>
    %cst_9 = arith.constant dense<0.000000e+00> : vector<8xf32>
    %20 = vector.multi_reduction <add>, %19, %cst_9 [1] : vector<8x128xf32> to vector<8xf32>
    %21 = vector.shape_cast %20 : vector<8xf32> to vector<8x1xf32>
    %22 = tpu.reciprocal %21 : vector<8x1xf32> -> vector<8x1xf32>
    %23 = vector.broadcast %22 : vector<8x1xf32> to vector<8x128xf32>
    %24 = arith.mulf %19, %23 : vector<8x128xf32>
    %c0_10 = arith.constant 0 : index
    %c0_11 = arith.constant 0 : index
    %25 = vector.load %arg4[%c0_10, %c0_11] : memref<8x128xf32, #tpu.memory_space<vmem>>, vector<8x128xf32>
    tpu.vector_store %arg4[%c0_10, %c0_11], %24 {strides = array<i32>} : memref<8x128xf32, #tpu.memory_space<vmem>>, vector<8x128xf32>,
    return
  }
  func.func @transform_0(%arg0: i32) -> (i32, i32) {
    %c0_i32 = arith.constant 0 : i32
    %c0_i32_0 = arith.constant 0 : i32
    return %arg0, %c0_i32 : i32, i32
  }
  func.func @transform_1(%arg0: i32) -> (i32, i32) {
    %c0_i32 = arith.constant 0 : i32
    %c0_i32_0 = arith.constant 0 : i32
    %c0_i32_1 = arith.constant 0 : i32
    return %c0_i32, %c0_i32_0 : i32, i32
  }
  func.func @transform_2(%arg0: i32) -> (i32, i32) {
    %c0_i32 = arith.constant 0 : i32
    %c0_i32_0 = arith.constant 0 : i32
    %c0_i32_1 = arith.constant 0 : i32
    return %c0_i32, %c0_i32_0 : i32, i32
  }
  func.func @transform_3(%arg0: i32) -> (i32, i32) {
    %c0_i32 = arith.constant 0 : i32
    %c0_i32_0 = arith.constant 0 : i32
    return %arg0, %c0_i32 : i32, i32
  }
}

module attributes {stable_mosaic.version = 11 : i64} {
  func.func @_clustering_kernel(%arg0: i32, %arg1: memref<8x32xf32, #tpu.memory_space<vmem>>, %arg2: memref<32x128xf32, #tpu.memory_space<vmem>>, %arg3: memref<1x128xf32, #tpu.memory_space<vmem>>, %arg4: memref<8x128xf32, #tpu.memory_space<vmem>>) attributes {dimension_semantics = [#tpu.dimension_semantics<parallel>], iteration_bounds = array<i64: 1>, scalar_prefetch = 0 : i64, scratch_operands = 0 : i64, tpu.core_type = #tpu.core_type<tc>, window_params = [{transform_indices = @transform_0, window_bounds = array<i64: 8, 32>}, {pipeline_mode = #tpu.pipeline_mode<synchronous>, transform_indices = @transform_1, window_bounds = array<i64: 32, 128>}, {pipeline_mode = #tpu.pipeline_mode<synchronous>, transform_indices = @transform_2, window_bounds = array<i64: 1, 128>}, {transform_indices = @transform_3, window_bounds = array<i64: 8, 128>}]} {
    %c0 = arith.constant 0 : index
    %c0_0 = arith.constant 0 : index
    %0 = vector.load %arg1[%c0, %c0_0] : memref<8x32xf32, #tpu.memory_space<vmem>>, vector<8x32xf32>
    %c0_1 = arith.constant 0 : index
    %c0_2 = arith.constant 0 : index
    %1 = vector.load %arg2[%c0_1, %c0_2] : memref<32x128xf32, #tpu.memory_space<vmem>>, vector<32x128xf32>
    %c0_3 = arith.constant 0 : index
    %c0_4 = arith.constant 0 : index
    %2 = vector.load %arg3[%c0_3, %c0_4] : memref<1x128xf32, #tpu.memory_space<vmem>>, vector<1x128xf32>
    %3 = arith.mulf %0, %0 : vector<8x32xf32>
    %cst = arith.constant dense<0.000000e+00> : vector<8xf32>
    %4 = vector.multi_reduction <add>, %3, %cst [1] : vector<8x32xf32> to vector<8xf32>
    %5 = vector.shape_cast %4 : vector<8xf32> to vector<8x1xf32>
    %cst_5 = arith.constant dense<0.000000e+00> : vector<8x128xf32>
    %6 = tpu.matmul %0, %1, %cst_5 {dimension_numbers = #tpu.dot_dimension_numbers<[1], [0], [0], [1], [0, 0, 1, 1], [], []>} : vector<8x32xf32>, vector<32x128xf32>, vector<8x128xf32> -> vector<8x128xf32>
    %7 = vector.broadcast %5 : vector<8x1xf32> to vector<8x128xf32>
    %8 = vector.broadcast %2 : vector<1x128xf32> to vector<8x128xf32>
    %9 = arith.addf %7, %8 : vector<8x128xf32>
    %10 = arith.addf %9, %6 : vector<8x128xf32>
    %cst_6 = arith.constant 0.000000e+00 : f32
    %11 = vector.broadcast %cst_6 : f32 to vector<8x128xf32>
    %12 = arith.maximumf %10, %11 : vector<8x128xf32>
    %cst_7 = arith.constant 1.000000e+00 : f32
    %13 = vector.broadcast %cst_7 : f32 to vector<8x128xf32>
    %14 = arith.addf %13, %12 : vector<8x128xf32>
    %15 = tpu.reciprocal %14 {approx = true} : vector<8x128xf32> -> vector<8x128xf32>
    %16 = arith.mulf %14, %15 : vector<8x128xf32>
    %cst_8 = arith.constant 2.000000e+00 : f32
    %17 = vector.broadcast %cst_8 : f32 to vector<8x128xf32>
    %18 = arith.subf %17, %16 : vector<8x128xf32>
    %19 = arith.mulf %15, %18 : vector<8x128xf32>
    %cst_9 = arith.constant dense<0.000000e+00> : vector<8xf32>
    %20 = vector.multi_reduction <add>, %19, %cst_9 [1] : vector<8x128xf32> to vector<8xf32>
    %21 = vector.shape_cast %20 : vector<8xf32> to vector<8x1xf32>
    %22 = tpu.reciprocal %21 : vector<8x1xf32> -> vector<8x1xf32>
    %23 = vector.broadcast %22 : vector<8x1xf32> to vector<8x128xf32>
    %24 = arith.mulf %19, %23 : vector<8x128xf32>
    %c0_10 = arith.constant 0 : index
    %c0_11 = arith.constant 0 : index
    %25 = vector.load %arg4[%c0_10, %c0_11] : memref<8x128xf32, #tpu.memory_space<vmem>>, vector<8x128xf32>
    tpu.vector_store %arg4[%c0_10, %c0_11], %24 {strides = array<i32>} : memref<8x128xf32, #tpu.memory_space<vmem>>, vector<8x128xf32>,
    return
  }
  func.func @transform_0(%arg0: i32) -> (i32, i32) {
    %c0_i32 = arith.constant 0 : i32
    %c0_i32_0 = arith.constant 0 : i32
    return %arg0, %c0_i32 : i32, i32
  }
  func.func @transform_1(%arg0: i32) -> (i32, i32) {
    %c0_i32 = arith.constant 0 : i32
    %c0_i32_0 = arith.constant 0 : i32
    %c0_i32_1 = arith.constant 0 : i32
    return %c0_i32, %c0_i32_0 : i32, i32
  }
  func.func @transform_2(%arg0: i32) -> (i32, i32) {
    %c0_i32 = arith.constant 0 : i32
    %c0_i32_0 = arith.constant 0 : i32
    %c0_i32_1 = arith.constant 0 : i32
    return %c0_i32, %c0_i32_0 : i32, i32
  }
  func.func @transform_3(%arg0: i32) -> (i32, i32) {
    %c0_i32 = arith.constant 0 : i32
    %c0_i32_0 = arith.constant 0 : i32
    return %arg0, %c0_i32 : i32, i32
  }
}

</mosaic_0001>

<bundles_post_ra>
// kernel: tpu_custom_call.1
= control target key start
LH: loop header
LB: loop body
LE: loop exit
PB: predicated region body
PF: predicated region fallthrough
CT: control target
= control target key end

     0   :  { %8 = vsyncpa [#allocation3], 0  ;;  %s342_s0 = inlined_call_operand.hbm [shape: f32[8,32], index: 0, kind: input, shape index: {}]   ;;  %s343_s1 = inlined_call_operand.hbm [shape: f32[32,128], index: 1, kind: input, shape index: {}]   ;;  %s344_s2 = inlined_call_operand.vmem [shape: f32[1,128], index: 2, kind: input, shape index: {}]   ;;  %s345_s3 = inlined_call_operand.hbm [shape: f32[8,128], index: 3, kind: output, shape index: {}]  }
   0x1   :  { %9 = vsyncpa [#allocation6], 0 }
   0x2   :  { %10 = vsyncpa [#allocation4], 0  ;;  %s268_s12 = smov [#allocation2]   ;;  %s269_s14 = smov [#allocation5]  }
   0x3   :  { %s17_s13 = sshll.u32 %s268_s12, 4  ;;  %s26_s15 = sshll.u32 %s269_s14, 4  ;;  %s18_s13 = int_to_ptr.vmem [resolvable:$true] %s17_s13  ;;  %s296_s15 = int_to_ptr.vmem [resolvable:$true] %s26_s15 }
   0x4   :  { %s196_s18 = scalar_lea.hbm %s342_s0, 128 }
   0x5   :  { %p197_p0 = scmp.ne.s32.totalorder %s342_s0, %s196_s18  ;;  %p200_p1 = scmp.lt.u32.totalorder %s196_s18, %s342_s0 }
   0x7   :  { %p202_p2 = pnand %p200_p1, %p197_p0 }
   0x9   :  { %205 = shalt.err (!%p202_p2)
}
   0xa   :  { %s206_s23 = scalar_lea.vmem %s18_s13, 128  ;;  %p211_p4 = scmp.lt.s32.totalorder %s18_s13, %s18_s13 }
   0xb   :  { %p207_p3 = scmp.ne.s32.totalorder %s18_s13, %s206_s23  ;;  %p212_p5 = scmp.lt.s32.totalorder %s206_s23, %s206_s23 }
   0xd   :  { %p213_p6 = por %p212_p5, %p211_p4 }
   0xf   :  { %p214_p7 = pnand %p213_p6, %p207_p3 }
  0x11   :  { %217 = shalt.err (!%p214_p7)
}
  0x12   :  { %20 = dma.hbm_to_vmem [thread:$0]  %s342_s0, 128, %s18_s13, [#allocation3]  }
  0x13   :  { %s218_s28 = scalar_lea.hbm %s343_s1, 512 }
  0x14   :  { %p219_p8 = scmp.ne.s32.totalorder %s343_s1, %s218_s28  ;;  %p222_p9 = scmp.lt.u32.totalorder %s218_s28, %s343_s1 }
  0x16   :  { %p224_p10 = pnand %p222_p9, %p219_p8 }
  0x18   :  { %227 = shalt.err (!%p224_p10)
}
  0x19   :  { %s228_s6 = scalar_lea.vmem %s296_s15, 512  ;;  %p233_p12 = scmp.lt.s32.totalorder %s296_s15, %s296_s15 }
  0x1a   :  { %p229_p11 = scmp.ne.s32.totalorder %s296_s15, %s228_s6  ;;  %p234_p13 = scmp.lt.s32.totalorder %s228_s6, %s228_s6 }
  0x1c   :  { %p235_p0 = por %p234_p13, %p233_p12 }
  0x1e   :  { %p236_p1 = pnand %p235_p0, %p229_p11 }
  0x20   :  { %239 = shalt.err (!%p236_p1)
}
  0x21   :  { %s270_s0 = smov 128   ;;  %s271_s7 = smov 8  }
  0x22   :  { %32 = dma.hbm_to_vmem [thread:$0]  %s343_s1, 512, %s296_s15, [#allocation6], %s270_s0, %s270_s0, %s271_s7  }
  0x23   :  { %262 = dma.done.wait [#allocation3], 128  }
  0x24   :  { %263 = vsyncadd [#allocation3], 4294967168 }
  0x25   :  { %264 = dma.done.wait [#allocation6], 512  }
  0x26   :  { %265 = vsyncadd [#allocation6], 4294966784  ;;  %v272_v0 = vmov 0.0|0.0   ;;  %vm273_vm0 = vmmov 0   ;;  %v274_v1 = vmov 0.0   ;;  %v42_v2 = vld [vmem:[#allocation5] sm:$0xff] }
  0x27   :  { %178 = vmatprep.subr.bf16.mxu0 %v272_v0  ;;  %175 = vmatprep.mubr.msk.f32.mxu0 %vm273_vm0, %v274_v1  ;;  %v43_v3 = vld [vmem:[#allocation5 + $0x8] sm:$0xff]  ;;  %v44_v4 = vld [vmem:[#allocation5 + $0x10] sm:$0xff]  ;;  %v45_v6 = vld [vmem:[#allocation5 + $0x18] sm:$0xff]  ;;  %vm48_vm1 = vcmask 261120   ;;  %s275_s11 = smov [#allocation7]  }
  0x28   :  { %v179_v5 = vpack.c.bf16 %v43_v3, %v42_v2  ;;  %v41_v7 = vld [vmem:[#allocation2] sm:$0xff]  ;;  %v182_v9 = vpack.c.bf16 %v45_v6, %v44_v4  ;;  %s150_s12 = sshll.u32 %s275_s11, 4  ;;  %s151_s12 = int_to_ptr.vmem [resolvable:$true] %s150_s12 }
  0x29   :  { %v47_v8 = vmul.f32 %v41_v7, %v41_v7  ;;  %v161_v11 = vld [vmem:[%s344_s2] ss:$0 sm:$0xff]  ;;  %s240_s2 = scalar_lea.vmem %s151_s12, 128  ;;  %p245_p3 = scmp.lt.s32.totalorder %s151_s12, %s151_s12 }
  0x2a   :  { %180 = vmatpush3.bf16.msra.mxu0 %v179_v5  ;;  %p241_p2 = scmp.ne.s32.totalorder %s151_s12, %s240_s2  ;;  %p246_p4 = scmp.lt.s32.totalorder %s240_s2, %s240_s2 }
  0x2b   :  { %181 = vmatprep.subr.bf16.mxu0 %v272_v0  ;;  %v49_v10 = vsel %vm48_vm1, %v47_v8, 0.0 }
  0x2c   :  { %50 = vadd.xlane.f32.xlu0 %v49_v10  ;;  %p247_p5 = por %p246_p4, %p245_p3 }
  0x2e   :  { %183 = vmatpush3.bf16.msra.mxu0 %v182_v9  ;;  %p248_p6 = pnand %p247_p5, %p241_p2 }
  0x31   :  { %176 = vmatmul.mubr.msk.f32.vlgmr.msra.gmra.mrb[0].mxu0 %vm48_vm1, %v41_v7 }
  0xb9   :  { %v51_v12 = vpop.xlane.xlu0 %50 }
  0xba   :  { %v131_v13 = vadd.f32 %v161_v11, %v51_v12 }
 0x104   :  { %v121_v14 = vpop.f32.mrb[0].mxu0 }
 0x105   :  { %v132_v15 = vadd.f32 %v131_v13, %v121_v14  ;;  %v177_v16 = vpop.f32.mrb[1].mxu0 }
 0x107   :  { %v133_v17 = vmax.f32 %v132_v15, 0.0 }
 0x109   :  { %v134_v18 = vadd.f32 1.0, %v133_v17 }
 0x10b   :  { %192 = vrcp.f32 %v134_v18 }
 0x115   :  { %v193_v19 = vpop.eup %192 }
 0x116   :  { %v136_v20 = vmul.f32 %v193_v19, %v134_v18 }
 0x118   :  { %v137_v21 = vsub.f32 2.0, %v136_v20 }
 0x11a   :  { %v138_v22 = vmul.f32 %v193_v19, %v137_v21 }
 0x11c   :  { %139 = vadd.xlane.f32.xlu0 %v138_v22 }
 0x1a9   :  { %v140_v23 = vpop.xlane.xlu0 %139 }
 0x1aa   :  { %194 = vrcp.f32 %v140_v23 }
 0x1b4   :  { %v195_v24 = vpop.eup %194 }
 0x1b5   :  { %v142_v25 = vmul.f32 %v195_v24, %v138_v22 }
 0x1b7   :  { %143 = vst [vmem:[#allocation7] sm:$0xff] %v142_v25 }
 0x1b8   :  { %251 = shalt.err (!%p248_p6)
}
 0x1b9   :  { %s252_s15 = scalar_lea.hbm %s345_s3, 128 }
 0x1ba   :  { %p253_p7 = scmp.ne.s32.totalorder %s345_s3, %s252_s15  ;;  %p256_p8 = scmp.lt.u32.totalorder %s252_s15, %s345_s3 }
 0x1bc   :  { %p258_p9 = pnand %p256_p8, %p253_p7 }
 0x1be   :  { %261 = shalt.err (!%p258_p9)
}
 0x1bf   :  { %153 = dma.vmem_to_hbm [thread:$0]  %s151_s12, 128, %s345_s3, [#allocation4]  }
 0x1c0   :  { %266 = dma.done.wait [#allocation4], 128  }
 0x1c1   :  { %267 = vsyncadd [#allocation4], 4294967168 }
 0x1c2   :  { %157 = vsyncpa [#allocation3], 1 }
 0x1c3   :  { %158 = vsyncpa [#allocation6], 1 }
 0x1c4   :  { %159 = vsyncpa [#allocation4], 1 }

// kernel: tpu_custom_call.1
= control target key start
LH: loop header
LB: loop body
LE: loop exit
PB: predicated region body
PF: predicated region fallthrough
CT: control target
= control target key end

     0   :  { %8 = vsyncpa [#allocation3], 0  ;;  %s342_s0 = inlined_call_operand.hbm [shape: f32[8,32], index: 0, kind: input, shape index: {}]   ;;  %s343_s1 = inlined_call_operand.hbm [shape: f32[32,128], index: 1, kind: input, shape index: {}]   ;;  %s344_s2 = inlined_call_operand.vmem [shape: f32[1,128], index: 2, kind: input, shape index: {}]   ;;  %s345_s3 = inlined_call_operand.hbm [shape: f32[8,128], index: 3, kind: output, shape index: {}]  }
   0x1   :  { %9 = vsyncpa [#allocation6], 0 }
   0x2   :  { %10 = vsyncpa [#allocation4], 0  ;;  %s268_s12 = smov [#allocation2]   ;;  %s269_s14 = smov [#allocation5]  }
   0x3   :  { %s17_s13 = sshll.u32 %s268_s12, 4  ;;  %s26_s15 = sshll.u32 %s269_s14, 4  ;;  %s18_s13 = int_to_ptr.vmem [resolvable:$true] %s17_s13  ;;  %s296_s15 = int_to_ptr.vmem [resolvable:$true] %s26_s15 }
   0x4   :  { %s196_s18 = scalar_lea.hbm %s342_s0, 128 }
   0x5   :  { %p197_p0 = scmp.ne.s32.totalorder %s342_s0, %s196_s18  ;;  %p200_p1 = scmp.lt.u32.totalorder %s196_s18, %s342_s0 }
   0x7   :  { %p202_p2 = pnand %p200_p1, %p197_p0 }
   0x9   :  { %205 = shalt.err (!%p202_p2)
}
   0xa   :  { %s206_s23 = scalar_lea.vmem %s18_s13, 128  ;;  %p211_p4 = scmp.lt.s32.totalorder %s18_s13, %s18_s13 }
   0xb   :  { %p207_p3 = scmp.ne.s32.totalorder %s18_s13, %s206_s23  ;;  %p212_p5 = scmp.lt.s32.totalorder %s206_s23, %s206_s23 }
   0xd   :  { %p213_p6 = por %p212_p5, %p211_p4 }
   0xf   :  { %p214_p7 = pnand %p213_p6, %p207_p3 }
  0x11   :  { %217 = shalt.err (!%p214_p7)
}
  0x12   :  { %20 = dma.hbm_to_vmem [thread:$0]  %s342_s0, 128, %s18_s13, [#allocation3]  }
  0x13   :  { %s218_s28 = scalar_lea.hbm %s343_s1, 512 }
  0x14   :  { %p219_p8 = scmp.ne.s32.totalorder %s343_s1, %s218_s28  ;;  %p222_p9 = scmp.lt.u32.totalorder %s218_s28, %s343_s1 }
  0x16   :  { %p224_p10 = pnand %p222_p9, %p219_p8 }
  0x18   :  { %227 = shalt.err (!%p224_p10)
}
  0x19   :  { %s228_s6 = scalar_lea.vmem %s296_s15, 512  ;;  %p233_p12 = scmp.lt.s32.totalorder %s296_s15, %s296_s15 }
  0x1a   :  { %p229_p11 = scmp.ne.s32.totalorder %s296_s15, %s228_s6  ;;  %p234_p13 = scmp.lt.s32.totalorder %s228_s6, %s228_s6 }
  0x1c   :  { %p235_p0 = por %p234_p13, %p233_p12 }
  0x1e   :  { %p236_p1 = pnand %p235_p0, %p229_p11 }
  0x20   :  { %239 = shalt.err (!%p236_p1)
}
  0x21   :  { %s270_s0 = smov 128   ;;  %s271_s7 = smov 8  }
  0x22   :  { %32 = dma.hbm_to_vmem [thread:$0]  %s343_s1, 512, %s296_s15, [#allocation6], %s270_s0, %s270_s0, %s271_s7  }
  0x23   :  { %262 = dma.done.wait [#allocation3], 128  }
  0x24   :  { %263 = vsyncadd [#allocation3], 4294967168 }
  0x25   :  { %264 = dma.done.wait [#allocation6], 512  }
  0x26   :  { %265 = vsyncadd [#allocation6], 4294966784  ;;  %v272_v0 = vmov 0.0|0.0   ;;  %vm273_vm0 = vmmov 0   ;;  %v274_v1 = vmov 0.0   ;;  %v42_v2 = vld [vmem:[#allocation5] sm:$0xff] }
  0x27   :  { %178 = vmatprep.subr.bf16.mxu0 %v272_v0  ;;  %175 = vmatprep.mubr.msk.f32.mxu0 %vm273_vm0, %v274_v1  ;;  %v43_v3 = vld [vmem:[#allocation5 + $0x8] sm:$0xff]  ;;  %v44_v4 = vld [vmem:[#allocation5 + $0x10] sm:$0xff]  ;;  %v45_v6 = vld [vmem:[#allocation5 + $0x18] sm:$0xff]  ;;  %vm48_vm1 = vcmask 261120   ;;  %s275_s11 = smov [#allocation7]  }
  0x28   :  { %v179_v5 = vpack.c.bf16 %v43_v3, %v42_v2  ;;  %v41_v7 = vld [vmem:[#allocation2] sm:$0xff]  ;;  %v182_v9 = vpack.c.bf16 %v45_v6, %v44_v4  ;;  %s150_s12 = sshll.u32 %s275_s11, 4  ;;  %s151_s12 = int_to_ptr.vmem [resolvable:$true] %s150_s12 }
  0x29   :  { %v47_v8 = vmul.f32 %v41_v7, %v41_v7  ;;  %v161_v11 = vld [vmem:[%s344_s2] ss:$0 sm:$0xff]  ;;  %s240_s2 = scalar_lea.vmem %s151_s12, 128  ;;  %p245_p3 = scmp.lt.s32.totalorder %s151_s12, %s151_s12 }
  0x2a   :  { %180 = vmatpush3.bf16.msra.mxu0 %v179_v5  ;;  %p241_p2 = scmp.ne.s32.totalorder %s151_s12, %s240_s2  ;;  %p246_p4 = scmp.lt.s32.totalorder %s240_s2, %s240_s2 }
  0x2b   :  { %181 = vmatprep.subr.bf16.mxu0 %v272_v0  ;;  %v49_v10 = vsel %vm48_vm1, %v47_v8, 0.0 }
  0x2c   :  { %50 = vadd.xlane.f32.xlu0 %v49_v10  ;;  %p247_p5 = por %p246_p4, %p245_p3 }
  0x2e   :  { %183 = vmatpush3.bf16.msra.mxu0 %v182_v9  ;;  %p248_p6 = pnand %p247_p5, %p241_p2 }
  0x31   :  { %176 = vmatmul.mubr.msk.f32.vlgmr.msra.gmra.mrb[0].mxu0 %vm48_vm1, %v41_v7 }
  0xb9   :  { %v51_v12 = vpop.xlane.xlu0 %50 }
  0xba   :  { %v131_v13 = vadd.f32 %v161_v11, %v51_v12 }
 0x104   :  { %v121_v14 = vpop.f32.mrb[0].mxu0 }
 0x105   :  { %v132_v15 = vadd.f32 %v131_v13, %v121_v14  ;;  %v177_v16 = vpop.f32.mrb[1].mxu0 }
 0x107   :  { %v133_v17 = vmax.f32 %v132_v15, 0.0 }
 0x109   :  { %v134_v18 = vadd.f32 1.0, %v133_v17 }
 0x10b   :  { %192 = vrcp.f32 %v134_v18 }
 0x115   :  { %v193_v19 = vpop.eup %192 }
 0x116   :  { %v136_v20 = vmul.f32 %v193_v19, %v134_v18 }
 0x118   :  { %v137_v21 = vsub.f32 2.0, %v136_v20 }
 0x11a   :  { %v138_v22 = vmul.f32 %v193_v19, %v137_v21 }
 0x11c   :  { %139 = vadd.xlane.f32.xlu0 %v138_v22 }
 0x1a9   :  { %v140_v23 = vpop.xlane.xlu0 %139 }
 0x1aa   :  { %194 = vrcp.f32 %v140_v23 }
 0x1b4   :  { %v195_v24 = vpop.eup %194 }
 0x1b5   :  { %v142_v25 = vmul.f32 %v195_v24, %v138_v22 }
 0x1b7   :  { %143 = vst [vmem:[#allocation7] sm:$0xff] %v142_v25 }
 0x1b8   :  { %251 = shalt.err (!%p248_p6)
}
 0x1b9   :  { %s252_s15 = scalar_lea.hbm %s345_s3, 128 }
 0x1ba   :  { %p253_p7 = scmp.ne.s32.totalorder %s345_s3, %s252_s15  ;;  %p256_p8 = scmp.lt.u32.totalorder %s252_s15, %s345_s3 }
 0x1bc   :  { %p258_p9 = pnand %p256_p8, %p253_p7 }
 0x1be   :  { %261 = shalt.err (!%p258_p9)
}
 0x1bf   :  { %153 = dma.vmem_to_hbm [thread:$0]  %s151_s12, 128, %s345_s3, [#allocation4]  }
 0x1c0   :  { %266 = dma.done.wait [#allocation4], 128  }
 0x1c1   :  { %267 = vsyncadd [#allocation4], 4294967168 }
 0x1c2   :  { %157 = vsyncpa [#allocation3], 1 }
 0x1c3   :  { %158 = vsyncpa [#allocation6], 1 }
 0x1c4   :  { %159 = vsyncpa [#allocation4], 1 }

</bundles_post_ra>
